<compile_context>
chip_gen: v7x
topology: tpu7x:2x2x1
jax: 0.10.0
libtpu: 0.0.40
codegen_flags: <defaults>
</compile_context>

<pallas_src>
import jax
import jax.numpy as jnp
from jax.experimental import pallas as pl
from jax.experimental.pallas import tpu as pltpu

_EPS = 1e-5


def _se_kernel(x_ref, w1t_ref, b1_ref, w2t_ref, b2_ref, o_ref):
    """Fused SE block for a batch-chunk of Nb images.

    x_ref  : (Nb, C, HW)  input, channels on sublanes, pixels on lanes
    w1t_ref: (C, Cr)      squeeze FC (1x1 conv), BN1 scale folded in, pre-transposed
    b1_ref : (1, Cr)      folded BN1 bias
    w2t_ref: (Cr, C)      excite FC (1x1 conv), BN2 scale folded in, pre-transposed
    b2_ref : (1, C)       folded BN2 bias
    o_ref  : (Nb, C, HW)  x * gate
    """
    x = x_ref[...]                                          # (Nb, C, HW), input dtype
    hw = x.shape[-1]

    # --- global average pool over the spatial (lane) axis, accumulated in f32 ---
    # (For very large HW a two-step VPU+XLU reduction would be preferable; at these
    #  sizes the single lane-reduce is negligible vs. the HBM-bound load/store.)
    xf = x.astype(jnp.float32)
    pooled = jnp.sum(xf, axis=-1) * (1.0 / hw)              # (Nb, C)

    # --- squeeze: 1x1 conv (no bias) + BN1 + ReLU, batched over Nb -> (Nb, Cr) ---
    y = jnp.dot(pooled, w1t_ref[...], preferred_element_type=jnp.float32)
    y = jnp.maximum(y + b1_ref[...], 0.0)

    # --- excite: 1x1 conv (no bias) + BN2 + hsigmoid, batched over Nb -> (Nb, C) ---
    z = jnp.dot(y, w2t_ref[...], preferred_element_type=jnp.float32) + b2_ref[...]
    gate = jnp.clip(z + 3.0, 0.0, 6.0) * (1.0 / 6.0)        # relu6(z+3)/6

    # --- gating: broadcast per-(image, channel) scalar across all pixels ---
    o_ref[...] = (xf * gate[:, :, None]).astype(o_ref.dtype)


def se_forward(x_nchw, params, *, block_budget_bytes=12 << 20):
    """SeModule forward.  Input/output are NCHW (PyTorch convention), any float dtype.

    The pool/FC/gate math runs in f32 regardless of the I/O dtype, so passing a
    bf16 tensor halves the HBM traffic of this memory-bound op without changing
    the squeeze-excite math.
    """
    N, C, H, W = x_nchw.shape
    Cr = params["w1"].shape[0]                              # C // reduction
    HW = H * W
    x_flat = x_nchw.reshape(N, C, HW)                       # free (contiguous)

    # ---- fold eval-mode BatchNorm into the conv weights / biases (glue, f32) ----
    g1, be1, m1, v1 = params["bn1"]
    s1 = (g1 / jnp.sqrt(v1 + _EPS)).astype(jnp.float32)
    w1t = (params["w1"].astype(jnp.float32) * s1[:, None]).T       # (C, Cr)
    b1 = (be1 - m1 * s1)[None, :].astype(jnp.float32)              # (1, Cr)

    g2, be2, m2, v2 = params["bn2"]
    s2 = (g2 / jnp.sqrt(v2 + _EPS)).astype(jnp.float32)
    w2t = (params["w2"].astype(jnp.float32) * s2[:, None]).T       # (Cr, C)
    b2 = (be2 - m2 * s2)[None, :].astype(jnp.float32)              # (1, C)

    # ---- pick how many images per block: as many as fit a conservative VMEM budget
    #      (in + out, each double-buffered => 4 copies of the block resident).  For
    #      the test shape this packs the whole batch into ONE grid step. ----
    per_image = C * HW * x_flat.dtype.itemsize
    max_nb = max(1, block_budget_bytes // (4 * per_image))
    Nb = max(d for d in range(1, N + 1) if N % d == 0 and d <= max_nb)

    # NOTE: HW here (256) is a multiple of 128 -> lane-dense stores.  For SE layers
    # with HW not a multiple of 128, re-view the spatial axis (or fold part of C into
    # it) before calling to avoid masked partial stores.
    out_flat = pl.pallas_call(
        _se_kernel,
        out_shape=jax.ShapeDtypeStruct((N, C, HW), x_flat.dtype),
        grid_spec=pltpu.PrefetchScalarGridSpec(
            num_scalar_prefetch=0,
            grid=(N // Nb,),
            in_specs=[
                pl.BlockSpec((Nb, C, HW), lambda n: (n, 0, 0)),
                pl.BlockSpec((C, Cr), lambda n: (0, 0)),
                pl.BlockSpec((1, Cr), lambda n: (0, 0)),
                pl.BlockSpec((Cr, C), lambda n: (0, 0)),
                pl.BlockSpec((1, C), lambda n: (0, 0)),
            ],
            out_specs=pl.BlockSpec((Nb, C, HW), lambda n: (n, 0, 0)),
        ),
        compiler_params=pltpu.CompilerParams(
            dimension_semantics=("parallel",)),
    )(x_flat, w1t, b1, w2t, b2)

    return out_flat.reshape(N, C, H, W)


def ref_forward(x, params):
    """Pure-JAX reference mirroring the PyTorch SeModule (eval-mode BN), f32."""
    x = x.astype(jnp.float32)

    def bn(y, p):
        g, b, m, v = p
        s = g / jnp.sqrt(v + _EPS)
        return y * s[None, :] + (b - m * s)[None, :]

    pooled = jnp.mean(x, axis=(2, 3))                      # (N, C)
    y = pooled @ params["w1"].T                            # (N, Cr)
    y = jax.nn.relu(bn(y, params["bn1"]))
    z = y @ params["w2"].T                                 # (N, C)
    z = bn(z, params["bn2"])
    gate = jnp.clip(z + 3.0, 0.0, 6.0) / 6.0               # hsigmoid
    return x * gate[:, :, None, None]


if __name__ == "__main__":
    key = jax.random.PRNGKey(0)
    N, C, H, W = 2, 16, 16, 16                             # in_size=16, reduction=4
    Cr = C // 4
    ks = jax.random.split(key, 8)

    x = jax.random.normal(ks[0], (N, C, H, W), jnp.float32)

    def bn_params(k, n):
        k1, k2, k3, k4 = jax.random.split(k, 4)
        gamma = 1.0 + 0.1 * jax.random.normal(k1, (n,), jnp.float32)
        beta = 0.1 * jax.random.normal(k2, (n,), jnp.float32)
        mean = 0.1 * jax.random.normal(k3, (n,), jnp.float32)
        var = 1.0 + 0.1 * jnp.abs(jax.random.normal(k4, (n,), jnp.float32))
        return (gamma, beta, mean, var)

    params = {
        "w1": 0.3 * jax.random.normal(ks[1], (Cr, C), jnp.float32),   # squeeze conv (out,in)
        "w2": 0.3 * jax.random.normal(ks[2], (C, Cr), jnp.float32),   # excite conv (out,in)
        "bn1": bn_params(ks[3], Cr),
        "bn2": bn_params(ks[4], C),
    }

    # ---- f32 path: exact PyTorch-module numerics ----
    out = jax.block_until_ready(se_forward(x, params))
    ref = ref_forward(x, params)
    assert out.shape == (N, C, H, W), out.shape
    assert jnp.allclose(out, ref, rtol=1e-4, atol=1e-4), \
        float(jnp.max(jnp.abs(out - ref)))

    # ---- bf16 I/O fast path: halved HBM traffic, f32 math inside the kernel ----
    x_bf = x.astype(jnp.bfloat16)
    out_bf = jax.block_until_ready(se_forward(x_bf, params))
    ref_bf = ref_forward(x_bf.astype(jnp.float32), params)
    assert out_bf.dtype == jnp.bfloat16
    assert jnp.allclose(out_bf.astype(jnp.float32), ref_bf, rtol=3e-2, atol=3e-2), \
        float(jnp.max(jnp.abs(out_bf.astype(jnp.float32) - ref_bf)))

    print("KERNEL_OK")
</pallas_src>

<mosaic_0001>
module attributes {stable_mosaic.version = 11 : i64} {
  func.func @_se_kernel(%arg0: i32, %arg1: memref<2x16x256xf32, #tpu.memory_space<vmem>>, %arg2: memref<16x4xf32, #tpu.memory_space<vmem>>, %arg3: memref<1x4xf32, #tpu.memory_space<vmem>>, %arg4: memref<4x16xf32, #tpu.memory_space<vmem>>, %arg5: memref<1x16xf32, #tpu.memory_space<vmem>>, %arg6: memref<2x16x256xf32, #tpu.memory_space<vmem>>) attributes {dimension_semantics = [#tpu.dimension_semantics<parallel>], iteration_bounds = array<i64: 1>, scalar_prefetch = 0 : i64, scratch_operands = 0 : i64, tpu.core_type = #tpu.core_type<tc>, window_params = [{transform_indices = @transform_0, window_bounds = array<i64: 2, 16, 256>}, {pipeline_mode = #tpu.pipeline_mode<synchronous>, transform_indices = @transform_1, window_bounds = array<i64: 16, 4>}, {pipeline_mode = #tpu.pipeline_mode<synchronous>, transform_indices = @transform_2, window_bounds = array<i64: 1, 4>}, {pipeline_mode = #tpu.pipeline_mode<synchronous>, transform_indices = @transform_3, window_bounds = array<i64: 4, 16>}, {pipeline_mode = #tpu.pipeline_mode<synchronous>, transform_indices = @transform_4, window_bounds = array<i64: 1, 16>}, {transform_indices = @transform_5, window_bounds = array<i64: 2, 16, 256>}]} {
    %c0 = arith.constant 0 : index
    %c0_0 = arith.constant 0 : index
    %c0_1 = arith.constant 0 : index
    %0 = vector.load %arg1[%c0, %c0_0, %c0_1] : memref<2x16x256xf32, #tpu.memory_space<vmem>>, vector<2x16x256xf32>
    %cst = arith.constant dense<0.000000e+00> : vector<2x16xf32>
    %1 = vector.multi_reduction <add>, %0, %cst [2] : vector<2x16x256xf32> to vector<2x16xf32>
    %cst_2 = arith.constant 3.906250e-03 : f32
    %2 = vector.broadcast %cst_2 : f32 to vector<2x16xf32>
    %3 = arith.mulf %1, %2 : vector<2x16xf32>
    %c0_3 = arith.constant 0 : index
    %c0_4 = arith.constant 0 : index
    %4 = vector.load %arg2[%c0_3, %c0_4] : memref<16x4xf32, #tpu.memory_space<vmem>>, vector<16x4xf32>
    %cst_5 = arith.constant dense<0.000000e+00> : vector<2x4xf32>
    %5 = tpu.matmul %3, %4, %cst_5 {dimension_numbers = #tpu.dot_dimension_numbers<[1], [0], [0], [1], [0, 0, 1, 1], [], []>} : vector<2x16xf32>, vector<16x4xf32>, vector<2x4xf32> -> vector<2x4xf32>
    %c0_6 = arith.constant 0 : index
    %c0_7 = arith.constant 0 : index
    %6 = vector.load %arg3[%c0_6, %c0_7] : memref<1x4xf32, #tpu.memory_space<vmem>>, vector<1x4xf32>
    %7 = vector.broadcast %6 : vector<1x4xf32> to vector<2x4xf32>
    %8 = arith.addf %5, %7 : vector<2x4xf32>
    %cst_8 = arith.constant 0.000000e+00 : f32
    %9 = vector.broadcast %cst_8 : f32 to vector<2x4xf32>
    %10 = arith.maximumf %8, %9 : vector<2x4xf32>
    %c0_9 = arith.constant 0 : index
    %c0_10 = arith.constant 0 : index
    %11 = vector.load %arg4[%c0_9, %c0_10] : memref<4x16xf32, #tpu.memory_space<vmem>>, vector<4x16xf32>
    %cst_11 = arith.constant dense<0.000000e+00> : vector<2x16xf32>
    %12 = tpu.matmul %10, %11, %cst_11 {dimension_numbers = #tpu.dot_dimension_numbers<[1], [0], [0], [1], [0, 0, 1, 1], [], []>} : vector<2x4xf32>, vector<4x16xf32>, vector<2x16xf32> -> vector<2x16xf32>
    %c0_12 = arith.constant 0 : index
    %c0_13 = arith.constant 0 : index
    %13 = vector.load %arg5[%c0_12, %c0_13] : memref<1x16xf32, #tpu.memory_space<vmem>>, vector<1x16xf32>
    %14 = vector.broadcast %13 : vector<1x16xf32> to vector<2x16xf32>
    %15 = arith.addf %12, %14 : vector<2x16xf32>
    %cst_14 = arith.constant 3.000000e+00 : f32
    %16 = vector.broadcast %cst_14 : f32 to vector<2x16xf32>
    %17 = arith.addf %15, %16 : vector<2x16xf32>
    %cst_15 = arith.constant 0.000000e+00 : f32
    %cst_16 = arith.constant 6.000000e+00 : f32
    %18 = vector.broadcast %cst_15 : f32 to vector<2x16xf32>
    %19 = arith.maximumf %18, %17 : vector<2x16xf32>
    %20 = vector.broadcast %cst_16 : f32 to vector<2x16xf32>
    %21 = arith.minimumf %20, %19 : vector<2x16xf32>
    %cst_17 = arith.constant 0.166666672 : f32
    %22 = vector.broadcast %cst_17 : f32 to vector<2x16xf32>
    %23 = arith.mulf %21, %22 : vector<2x16xf32>
    %24 = vector.shape_cast %23 : vector<2x16xf32> to vector<2x16x1xf32>
    %25 = vector.broadcast %24 : vector<2x16x1xf32> to vector<2x16x256xf32>
    %26 = arith.mulf %0, %25 : vector<2x16x256xf32>
    %c0_18 = arith.constant 0 : index
    %c0_19 = arith.constant 0 : index
    %c0_20 = arith.constant 0 : index
    %27 = vector.load %arg6[%c0_18, %c0_19, %c0_20] : memref<2x16x256xf32, #tpu.memory_space<vmem>>, vector<2x16x256xf32>
    tpu.vector_store %arg6[%c0_18, %c0_19, %c0_20], %26 {strides = array<i32>} : memref<2x16x256xf32, #tpu.memory_space<vmem>>, vector<2x16x256xf32>,
    return
  }
  func.func @transform_0(%arg0: i32) -> (i32, i32, i32) {
    %c0_i32 = arith.constant 0 : i32
    %c0_i32_0 = arith.constant 0 : i32
    %c0_i32_1 = arith.constant 0 : i32
    return %arg0, %c0_i32, %c0_i32_0 : i32, i32, i32
  }
  func.func @transform_1(%arg0: i32) -> (i32, i32) {
    %c0_i32 = arith.constant 0 : i32
    %c0_i32_0 = arith.constant 0 : i32
    %c0_i32_1 = arith.constant 0 : i32
    return %c0_i32, %c0_i32_0 : i32, i32
  }
  func.func @transform_2(%arg0: i32) -> (i32, i32) {
    %c0_i32 = arith.constant 0 : i32
    %c0_i32_0 = arith.constant 0 : i32
    %c0_i32_1 = arith.constant 0 : i32
    return %c0_i32, %c0_i32_0 : i32, i32
  }
  func.func @transform_3(%arg0: i32) -> (i32, i32) {
    %c0_i32 = arith.constant 0 : i32
    %c0_i32_0 = arith.constant 0 : i32
    %c0_i32_1 = arith.constant 0 : i32
    return %c0_i32, %c0_i32_0 : i32, i32
  }
  func.func @transform_4(%arg0: i32) -> (i32, i32) {
    %c0_i32 = arith.constant 0 : i32
    %c0_i32_0 = arith.constant 0 : i32
    %c0_i32_1 = arith.constant 0 : i32
    return %c0_i32, %c0_i32_0 : i32, i32
  }
  func.func @transform_5(%arg0: i32) -> (i32, i32, i32) {
    %c0_i32 = arith.constant 0 : i32
    %c0_i32_0 = arith.constant 0 : i32
    %c0_i32_1 = arith.constant 0 : i32
    return %arg0, %c0_i32, %c0_i32_0 : i32, i32, i32
  }
}

</mosaic_0001>

<bundles_post_ra>
// kernel: tpu_custom_call.1
= control target key start
LH: loop header
LB: loop body
LE: loop exit
PB: predicated region body
PF: predicated region fallthrough
CT: control target
= control target key end

     0   :  { %10 = vsyncpa [#allocation3], 0  ;;  %s509_s0 = inlined_call_operand.hbm [shape: f32[2,16,256], index: 0, kind: input, shape index: {}]   ;;  %s510_s1 = inlined_call_operand.vmem [shape: f32[16,4], index: 1, kind: input, shape index: {}]   ;;  %s511_s2 = inlined_call_operand.vmem [shape: f32[1,4], index: 2, kind: input, shape index: {}]   ;;  %s512_s3 = inlined_call_operand.vmem [shape: f32[4,16], index: 3, kind: input, shape index: {}]   ;;  %s513_s4 = inlined_call_operand.vmem [shape: f32[1,16], index: 4, kind: input, shape index: {}]   ;;  %s514_s5 = inlined_call_operand.hbm [shape: f32[2,16,256], index: 5, kind: output, shape index: {}]  }
   0x1   :  { %11 = vsyncpa [#allocation4], 0  ;;  %s395_s18 = smov [#allocation2]   ;;  %s347_s22 = scalar_lea.hbm %s509_s0, 1024 }
   0x2   :  { %s17_s19 = sshll.u32 %s395_s18, 4  ;;  %p348_p0 = scmp.ne.s32.totalorder %s509_s0, %s347_s22  ;;  %s18_s19 = int_to_ptr.vmem [resolvable:$true] %s17_s19 }
   0x3   :  { %p351_p1 = scmp.lt.u32.totalorder %s347_s22, %s509_s0 }
   0x5   :  { %p353_p2 = pnand %p351_p1, %p348_p0 }
   0x7   :  { %356 = shalt.err (!%p353_p2)
}
   0x8   :  { %s357_s27 = scalar_lea.vmem %s18_s19, 1024  ;;  %p362_p4 = scmp.lt.s32.totalorder %s18_s19, %s18_s19 }
   0x9   :  { %p358_p3 = scmp.ne.s32.totalorder %s18_s19, %s357_s27  ;;  %p363_p5 = scmp.lt.s32.totalorder %s357_s27, %s357_s27 }
   0xb   :  { %p364_p6 = por %p363_p5, %p362_p4 }
   0xd   :  { %p365_p7 = pnand %p364_p6, %p358_p3 }
   0xf   :  { %368 = shalt.err (!%p365_p7)
}
  0x10   :  { %s396_s28 = smov 256   ;;  %s397_s29 = smov 16  }
  0x11   :  { %23 = dma.hbm_to_vmem [thread:$0]  %s509_s0, 1024, %s18_s19, [#allocation3], %s396_s28, %s396_s28, %s397_s29  }
  0x12   :  { %391 = dma.done.wait [#allocation3], 1024  }
  0x13   :  { %392 = vsyncadd [#allocation3], 4294966272  ;;  %v447_v0 = vld [vmem:[#allocation2 + $0x20] sm:$0xff]  ;;  %v449_v1 = vld [vmem:[#allocation2 + $0x28] sm:$0xff]  ;;  %v398_v15 = vmov 0.0|0.0   ;;  %vm399_vm0 = vmmov 0   ;;  %v72_v17 = vlaneseq }
  0x14   :  { %v451_v2 = vld [vmem:[#allocation2] sm:$0xff]  ;;  %v49_v3 = vadd.f32 %v449_v1, %v447_v0  ;;  %v455_v4 = vld [vmem:[#allocation2 + $0x8] sm:$0xff]  ;;  %v457_v5 = vld [vmem:[#allocation2 + $0x30] sm:$0xff]  ;;  %337 = vmatprep.subr.bf16.mxu0 %v398_v15  ;;  %v400_v16 = vmov 0.0   ;;  %vm83_vm1 = vcmask 130112   ;;  %vm94_vm2 = vcmask 1041409  }
  0x15   :  { %v459_v6 = vld [vmem:[#allocation2 + $0x38] sm:$0xff]  ;;  %v43_v7 = vadd.f32 %v455_v4, %v451_v2  ;;  %v463_v8 = vld [vmem:[#allocation2 + $0x10] sm:$0xff]  ;;  %v59_v12 = vld [vmem:[%s510_s1] sm:$0xff]  ;;  %329 = vmatprep.mubr.msk.f32.mxu0 %vm399_vm0, %v400_v16  ;;  %332 = vmatprep.subr.mxu1 %v400_v16  ;;  %v73_v18 = vand.u32 127, %v72_v17  ;;  %v75_v19 = vshrl.u32 %v72_v17, 7  ;;  %vm96_vm3 = vcmask 130048  }
  0x16   :  { %v465_v9 = vld [vmem:[#allocation2 + $0x18] sm:$0xff]  ;;  %50 = vadd.xlane.f32.xlu1 %v49_v3  ;;  %v52_v10 = vadd.f32 %v459_v6, %v457_v5  ;;  %v60_v13 = vld [vmem:[%s510_s1 + $0x8] sm:$0xff]  ;;  %334 = vmatprep.mubr.msk.f32.mxu1 %vm399_vm0, %v400_v16  ;;  %v170_v38 = vld [vmem:[%s512_s3] sm:$0xf]  ;;  %vm182_vm4 = vcmask 1043456   ;;  %vm178_vm5 = vcmask 31744  }
  0x17   :  { %44 = vadd.xlane.f32.xlu0 %v43_v7  ;;  %v46_v11 = vadd.f32 %v465_v9, %v463_v8  ;;  %v338_v14 = vpack.c.bf16 %v60_v13, %v59_v12  ;;  %v78_v20 = vadd.s32 4294967288, %v73_v18  ;;  %v76_v23 = vsub.s32 %v73_v18, %v75_v19  ;;  %333 = vmatpush3.msk.msra.mxu1 %vm182_vm4, %v170_v38  ;;  %v315_v39 = vld [vmem:[%s511_s2] ss:$0 sm:$0xff]  ;;  %s401_s2 = smov [#allocation5]  }
  0x18   :  { %v317_v44 = vld [vmem:[%s513_s4] ss:$0 sm:$0xff]  ;;  %v262_v51 = vsub.s32 0, %v75_v19  ;;  %v273_v54 = vsub.s32 1, %v75_v19  ;;  %s303_s3 = sshll.u32 %s401_s2, 4  ;;  %s304_s3 = int_to_ptr.vmem [resolvable:$true] %s303_s3 }
  0x19   :  { %339 = vmatpush3.bf16.msra.mxu0 %v338_v14  ;;  %v81_v25 = vsub.s32 %v78_v20, %v75_v19  ;;  %s369_s4 = scalar_lea.vmem %s304_s3, 1024  ;;  %p374_p9 = scmp.lt.s32.totalorder %s304_s3, %s304_s3 }
  0x1a   :  { %53 = vadd.xlane.f32.xlu1 %v52_v10  ;;  %p370_p8 = scmp.ne.s32.totalorder %s304_s3, %s369_s4  ;;  %p375_p10 = scmp.lt.s32.totalorder %s369_s4, %s369_s4 }
  0x1b   :  { %47 = vadd.xlane.f32.xlu0 %v46_v11 }
  0x1c   :  { %p376_p11 = por %p375_p10, %p374_p9 }
  0x1e   :  { %p377_p12 = pnand %p376_p11, %p370_p8 }
  0xa3   :  { %v51_v21 = vpop.xlane.xlu1 %50 }
  0xa4   :  { %v45_v22 = vpop.xlane.xlu0 %44  ;;  %v57_v24 = vmul.f32 0.00390625, %v51_v21 }
  0xa5   :  { %v55_v26 = vmul.f32 0.00390625, %v45_v22 }
  0xa6   :  { %v88_v31 = vrot.slane %v57_v24, %v76_v23 }
  0xa7   :  { %v54_v27 = vpop.xlane.xlu1 %53  ;;  %v77_v33 = vrot.slane %v55_v26, %v76_v23 }
  0xa8   :  { %v58_v28 = vmul.f32 0.00390625, %v54_v27  ;;  %v48_v29 = vpop.xlane.xlu0 %47 }
  0xa9   :  { %v56_v30 = vmul.f32 0.00390625, %v48_v29 }
  0xaa   :  { %v92_v32 = vrot.slane %v58_v28, %v81_v25 }
  0xab   :  { %v82_v34 = vrot.slane %v56_v30, %v81_v25 }
  0xac   :  { %v93_v35 = vsel %vm83_vm1, %v92_v32, %v88_v31 }
  0xad   :  { %v84_v36 = vsel %vm83_vm1, %v82_v34, %v77_v33 }
  0xae   :  { %v95_v37 = vsel %vm94_vm2, %v93_v35, %v84_v36 }
  0xaf   :  { %330 = vmatmul.mubr.msk.f32.vlgmr.msra.gmra.mrb[0].mxu0 %vm96_vm3, %v95_v37 }
 0x182   :  { %v165_v40 = vpop.f32.mrb[0].mxu0 }
 0x183   :  { %v166_v41 = vadd.f32 %v315_v39, %v165_v40  ;;  %v331_v42 = vpop.f32.mrb[1].mxu0 }
 0x185   :  { %v169_v43 = vmax.f32 %v166_v41, 0.0 }
 0x187   :  { %335 = vmatmul.mubr.msk.f32.vlgmr.msra.gmra.mrb[0].mxu1 %vm178_vm5, %v169_v43 }
 0x25a   :  { %v252_v45 = vpop.f32.mrb[0].mxu1 }
 0x25b   :  { %v253_v46 = vadd.f32 %v317_v44, %v252_v45  ;;  %v336_v47 = vpop.f32.mrb[1].mxu1 }
 0x25d   :  { %v256_v48 = vadd.f32 3.0, %v253_v46 }
 0x25f   :  { %v257_v49 = vmax.f32 %v256_v48, 0.0 }
 0x261   :  { %v258_v50 = vmin.f32 %v257_v49, 6.0 }
 0x263   :  { %v259_v52 = vmul.f32 0.16666667, %v258_v50 }
 0x265   :  { %v263_v53 = vrot.slane %v259_v52, %v262_v51  ;;  %v274_v55 = vrot.slane %v259_v52, %v273_v54 }
 0x267   :  { %269 = vbcast.lane.b32.xlu1 %v263_v53, 264  ;;  %265 = vbcast.lane.b32.xlu0 %v263_v53, 256 }
 0x26b   :  { %276 = vbcast.lane.b32.xlu1 %v274_v55, 256 }
 0x26f   :  { %280 = vbcast.lane.b32.xlu1 %v274_v55, 264 }
 0x2d9   :  { %v270_v56 = vpop.permute.xlu1 %269  ;;  %v266_v57 = vpop.permute.xlu0 %265 }
 0x2da   :  { %v284_v58 = vmul.f32 %v270_v56, %v463_v8  ;;  %v285_v59 = vmul.f32 %v270_v56, %v465_v9  ;;  %v282_v60 = vmul.f32 %v266_v57, %v451_v2  ;;  %v283_v61 = vmul.f32 %v266_v57, %v455_v4 }
 0x2dc   :  { %292 = vst [vmem:[#allocation5 + $0x10] sm:$0xff] %v284_v58  ;;  %293 = vst [vmem:[#allocation5 + $0x18] sm:$0xff] %v285_v59 }
 0x2dd   :  { %290 = vst [vmem:[#allocation5] sm:$0xff] %v282_v60  ;;  %291 = vst [vmem:[#allocation5 + $0x8] sm:$0xff] %v283_v61  ;;  %v277_v62 = vpop.permute.xlu1 %276 }
 0x2de   :  { %v286_v63 = vmul.f32 %v277_v62, %v447_v0  ;;  %v287_v3 = vmul.f32 %v277_v62, %v449_v1 }
 0x2e0   :  { %294 = vst [vmem:[#allocation5 + $0x20] sm:$0xff] %v286_v63  ;;  %295 = vst [vmem:[#allocation5 + $0x28] sm:$0xff] %v287_v3 }
 0x2e1   :  { %v281_v7 = vpop.permute.xlu1 %280 }
 0x2e2   :  { %v288_v8 = vmul.f32 %v281_v7, %v457_v5  ;;  %v289_v2 = vmul.f32 %v281_v7, %v459_v6 }
 0x2e4   :  { %296 = vst [vmem:[#allocation5 + $0x30] sm:$0xff] %v288_v8  ;;  %297 = vst [vmem:[#allocation5 + $0x38] sm:$0xff] %v289_v2 }
 0x2e5   :  { %380 = shalt.err (!%p377_p12)
}
 0x2e6   :  { %s381_s17 = scalar_lea.hbm %s514_s5, 1024 }
 0x2e7   :  { %p382_p13 = scmp.ne.s32.totalorder %s514_s5, %s381_s17  ;;  %p385_p0 = scmp.lt.u32.totalorder %s381_s17, %s514_s5 }
 0x2e9   :  { %p387_p1 = pnand %p385_p0, %p382_p13 }
 0x2eb   :  { %390 = shalt.err (!%p387_p1)
}
 0x2ec   :  { %309 = dma.vmem_to_hbm [thread:$0]  %s304_s3, 1024, %s514_s5, [#allocation4], %s396_s28, %s396_s28, %s397_s29  }
 0x2ed   :  { %393 = dma.done.wait [#allocation4], 1024  }
 0x2ee   :  { %394 = vsyncadd [#allocation4], 4294966272 }
 0x2ef   :  { %313 = vsyncpa [#allocation3], 1 }
 0x2f0   :  { %314 = vsyncpa [#allocation4], 1 }

</bundles_post_ra>
